<compile_context>
chip_gen: v6e
topology: v6e:2x2x1
jax: 0.10.0
libtpu: 0.0.40
codegen_flags: <defaults>
</compile_context>

<pallas_src>
import functools

import jax
import jax.numpy as jnp
from jax.experimental import pallas as pl
from jax.experimental.pallas import tpu as pltpu


LANE = 128


def _round_up(x, m):
    return ((x + m - 1) // m) * m


# ---------------------------------------------------------------------------
# Pallas kernel: K-tiled  acc(init=bias) += patches @ W ; final: [+res] [relu]
# ---------------------------------------------------------------------------
def _fused_kernel(*refs, apply_relu: bool, residual_mode: str):
    if residual_mode == "downsample":
        x_ref, w_ref, b_ref, xd_ref, wd_ref, bd_ref, o_ref, acc_ref = refs
    elif residual_mode == "identity":
        x_ref, w_ref, b_ref, r_ref, o_ref, acc_ref = refs
    else:
        x_ref, w_ref, b_ref, o_ref, acc_ref = refs

    k = pl.program_id(1)
    nk = pl.num_programs(1)

    @pl.when(k == 0)
    def _init():
        # Fold the BN bias into the accumulator init (no separate epilogue add).
        acc_ref[...] = jnp.broadcast_to(b_ref[...], acc_ref.shape)

    acc_ref[...] += jnp.dot(x_ref[...], w_ref[...],
                            preferred_element_type=jnp.float32)

    @pl.when(k == nk - 1)
    def _finalize():
        out = acc_ref[...]
        if residual_mode == "downsample":
            # Fused 1x1-conv + BN residual branch (tiny matmul, rides along).
            out = out + (jnp.dot(xd_ref[...], wd_ref[...],
                                 preferred_element_type=jnp.float32)
                         + bd_ref[...])
        elif residual_mode == "identity":
            out = out + r_ref[...].astype(jnp.float32)
        if apply_relu:
            # ReLU after the (possible) residual add; this block only uses
            # relu on the conv1 path (no residual there).
            out = jnp.maximum(out, 0.0)
        o_ref[...] = out.astype(o_ref.dtype)


# ---------------------------------------------------------------------------
# Wrapper: padding, tiling, bf16 casts, pallas_call
# ---------------------------------------------------------------------------
def fused_conv_bn(patches, w_mat, bias, *, residual=None, downsample=None,
                  apply_relu=False, out_dtype=jnp.float32,
                  tm_target=256, tk_target=512):
    """Fused (patches @ scale-folded W) + bias [+ residual] [-> relu].

    patches: (M, K) activation patch matrix.
    w_mat:   (K, Cout) scale-folded weight matrix (any float dtype; cast bf16).
    bias:    (Cout,)   folded BN bias (kept f32).
    residual:   optional (M, Cout) tensor added at the end (identity path).
    downsample: optional (xd, wd, bias_d): fused 1x1-conv+BN residual with
                xd (M, Cd), wd (Cd, Cout), bias_d (Cout,).
    Returns (M, Cout) in out_dtype.
    """
    assert residual is None or downsample is None
    M, K = patches.shape
    Cout = w_mat.shape[1]
    cout_pad = _round_up(Cout, LANE)          # lane-dense output stores

    # ---- M tiling: big tiles, >= 2 grid steps when possible (megacore).
    tm = min(tm_target, _round_up(max(-(-M // 2), 8), 8))
    m_pad = _round_up(M, tm)

    # ---- K tiling: one full-K block when small, else aligned K tiles.
    if K <= 2048:
        k_pad = _round_up(K, LANE)
        tk = k_pad
    else:
        tk = tk_target
        k_pad = _round_up(K, tk)
    nk = k_pad // tk

    # ---- operand prep: zero-pad + bf16 cast (bias / accumulator stay f32).
    x = jnp.pad(patches, ((0, m_pad - M), (0, k_pad - K))).astype(jnp.bfloat16)
    w = jnp.pad(w_mat.astype(jnp.bfloat16),
                ((0, k_pad - K), (0, cout_pad - Cout)))
    b = jnp.pad(bias.reshape(1, Cout).astype(jnp.float32),
                ((0, 0), (0, cout_pad - Cout)))

    in_specs = [
        pl.BlockSpec((tm, tk), lambda i, k: (i, k)),            # patch tile
        pl.BlockSpec((tk, cout_pad), lambda i, k: (k, 0)),      # weight tile
        pl.BlockSpec((1, cout_pad), lambda i, k: (0, 0)),       # folded bias
    ]
    args = [x, w, b]
    residual_mode = "none"
    extra_bytes = 0
    extra_flops = 0

    if downsample is not None:
        residual_mode = "downsample"
        xd, wd, bd = downsample
        Cd = xd.shape[1]
        cd_pad = _round_up(Cd, LANE)
        xd = jnp.pad(xd, ((0, m_pad - M), (0, cd_pad - Cd))).astype(jnp.bfloat16)
        wd = jnp.pad(wd.astype(jnp.bfloat16),
                     ((0, cd_pad - Cd), (0, cout_pad - Cout)))
        bd = jnp.pad(bd.reshape(1, Cout).astype(jnp.float32),
                     ((0, 0), (0, cout_pad - Cout)))
        in_specs += [
            pl.BlockSpec((tm, cd_pad), lambda i, k: (i, 0)),
            pl.BlockSpec((cd_pad, cout_pad), lambda i, k: (0, 0)),
            pl.BlockSpec((1, cout_pad), lambda i, k: (0, 0)),
        ]
        args += [xd, wd, bd]
        extra_bytes = 2 * tm * cd_pad * 2 + cd_pad * cout_pad * 2 + cout_pad * 4
        extra_flops = 2 * m_pad * cd_pad * cout_pad
    elif residual is not None:
        residual_mode = "identity"
        # Keep the skip path in f32 (exact add, matching the reference module).
        r = jnp.pad(residual.astype(jnp.float32),
                    ((0, m_pad - M), (0, cout_pad - Cout)))
        in_specs.append(pl.BlockSpec((tm, cout_pad), lambda i, k: (i, 0)))
        args.append(r)
        extra_bytes = 2 * tm * cout_pad * 4

    out_bytes = jnp.dtype(out_dtype).itemsize
    vmem_est = (2 * tm * tk * 2                  # double-buffered patch tile
                + 2 * tk * cout_pad * 2          # double-buffered weight tile
                + 2 * tm * cout_pad * out_bytes  # output block
                + tm * cout_pad * 4              # f32 accumulator scratch
                + 2 * cout_pad * 4               # bias
                + extra_bytes)
    # Explicit scoped-VMEM budget; stays under v7x's 64 MiB physical VMEM.
    vmem_limit = int(min(max(2 * vmem_est, 32 * 2**20), 56 * 2**20))

    bytes_accessed = sum(int(a.size) * a.dtype.itemsize for a in args)
    bytes_accessed += m_pad * cout_pad * out_bytes
    cost = pl.CostEstimate(flops=2 * m_pad * k_pad * cout_pad + extra_flops,
                           transcendentals=0,
                           bytes_accessed=int(bytes_accessed))

    kernel = functools.partial(_fused_kernel, apply_relu=apply_relu,
                               residual_mode=residual_mode)

    out = pl.pallas_call(
        kernel,
        out_shape=jax.ShapeDtypeStruct((m_pad, cout_pad), out_dtype),
        grid=(m_pad // tm, nk),
        in_specs=in_specs,
        out_specs=pl.BlockSpec((tm, cout_pad), lambda i, k: (i, 0)),
        scratch_shapes=[pltpu.VMEM((tm, cout_pad), jnp.float32)],
        compiler_params=pltpu.CompilerParams(
            dimension_semantics=("parallel", "arbitrary"),
            vmem_limit_bytes=vmem_limit),
        cost_estimate=cost,
    )(*args)
    return out[:M, :Cout]


# ---------------------------------------------------------------------------
# Plain-JAX glue: im2col, weight/BN folding
# ---------------------------------------------------------------------------
def im2col(x_nhwc, ksize, stride, pad):
    N, H, W, C = x_nhwc.shape
    xp = jnp.pad(x_nhwc, ((0, 0), (pad, pad), (pad, pad), (0, 0)))
    Ho = (H + 2 * pad - ksize) // stride + 1
    Wo = (W + 2 * pad - ksize) // stride + 1
    cols = []
    for dy in range(ksize):
        for dx in range(ksize):
            cols.append(xp[:, dy:dy + stride * Ho:stride,
                           dx:dx + stride * Wo:stride, :])
    patches = jnp.concatenate(cols, axis=-1)  # (N, Ho, Wo, k*k*C)
    return patches.reshape(N * Ho * Wo, ksize * ksize * C), (N, Ho, Wo)


def conv_weight_to_matrix(w_oihw):
    # (Cout, Cin, kh, kw) -> (kh*kw*Cin, Cout), matching im2col ordering.
    Cout, Cin, kh, kw = w_oihw.shape
    return jnp.transpose(w_oihw, (2, 3, 1, 0)).reshape(kh * kw * Cin, Cout)


def fold_bn(gamma, beta, mean, var, eps=1e-5):
    scale = gamma / jnp.sqrt(var + eps)
    bias = beta - mean * scale
    return scale, bias


def prepare_params(raw, eps=1e-5):
    """One-time constant fold: BN scale into the (bf16) weight matrices, BN
    shift into a per-channel f32 bias (inference-mode BatchNorm)."""
    params = {}
    for name, wkey, bnkey in (("1", "w1", "bn1"), ("2", "w2", "bn2"),
                              ("d", "wd", "bnd")):
        if raw.get(wkey) is None:
            params["w" + name] = None
            continue
        s, b = fold_bn(*raw[bnkey], eps=eps)
        wm = conv_weight_to_matrix(raw[wkey]) * s[None, :]
        params["w" + name] = wm.astype(jnp.bfloat16)
        params["b" + name] = b.astype(jnp.float32)
    return params


# ---------------------------------------------------------------------------
# BasicBlockNoRelu forward (NHWC)
# ---------------------------------------------------------------------------
def basic_block_no_relu(x_nhwc, params, stride):
    N, H, W, Cin = x_nhwc.shape
    x_bf16 = x_nhwc.astype(jnp.bfloat16)

    # conv1 (3x3, stride, pad=1) -> bn1 -> relu
    p1, (N, Ho, Wo) = im2col(x_bf16, 3, stride, 1)
    out1 = fused_conv_bn(p1, params["w1"], params["b1"],
                         apply_relu=True, out_dtype=jnp.bfloat16)
    out1 = out1.reshape(N, Ho, Wo, -1)

    # conv2 (3x3, stride=1, pad=1) -> bn2 -> (+ residual), NO final relu.
    p2, _ = im2col(out1, 3, 1, 1)
    Cout = params["w2"].shape[1]
    if params.get("wd") is not None:
        # Downsample residual (1x1 conv with stride + BN) fused into conv2.
        xd = x_bf16[:, ::stride, ::stride, :].reshape(N * Ho * Wo, Cin)
        out = fused_conv_bn(p2, params["w2"], params["b2"],
                            downsample=(xd, params["wd"], params["bd"]),
                            apply_relu=False, out_dtype=jnp.float32)
    else:
        # Identity residual is only valid for stride==1 and Cin==Cout.
        assert stride == 1 and Cin == Cout, (
            "identity residual requires stride==1 and Cin==Cout")
        residual = x_nhwc.reshape(N * Ho * Wo, Cin)   # exact f32 skip path
        out = fused_conv_bn(p2, params["w2"], params["b2"],
                            residual=residual, apply_relu=False,
                            out_dtype=jnp.float32)
    return out.reshape(N, Ho, Wo, Cout)


# ---------------------------------------------------------------------------
# Pure-JAX f32 reference (for correctness check)
# ---------------------------------------------------------------------------
def ref_forward(x_nhwc, raw, stride, eps=1e-5):
    def conv(x, w_oihw, s, pad):
        w_hwio = jnp.transpose(w_oihw, (2, 3, 1, 0))
        return jax.lax.conv_general_dilated(
            x, w_hwio, (s, s), [(pad, pad), (pad, pad)],
            dimension_numbers=("NHWC", "HWIO", "NHWC"))

    def bn(x, g, b, m, v):
        return (x - m) / jnp.sqrt(v + eps) * g + b

    out = jax.nn.relu(bn(conv(x_nhwc, raw["w1"], stride, 1), *raw["bn1"]))
    out = bn(conv(out, raw["w2"], 1, 1), *raw["bn2"])
    if raw.get("wd") is not None:
        residual = bn(conv(x_nhwc, raw["wd"], stride, 0), *raw["bnd"])
    else:
        residual = x_nhwc
    return out + residual


# ---------------------------------------------------------------------------
# Main
# ---------------------------------------------------------------------------
if __name__ == "__main__":
    key = jax.random.PRNGKey(0)

    def bn_params(k, c):
        k1, k2, k3, k4 = jax.random.split(k, 4)
        gamma = 1.0 + 0.1 * jax.random.normal(k1, (c,), jnp.float32)
        beta = 0.1 * jax.random.normal(k2, (c,), jnp.float32)
        mean = 0.1 * jax.random.normal(k3, (c,), jnp.float32)
        var = jnp.abs(jax.random.normal(k4, (c,), jnp.float32)) + 0.5
        return gamma, beta, mean, var

    def check(raw, x_nhwc, stride, N, H, W, Cout):
        params = prepare_params(raw)
        fwd = jax.jit(functools.partial(basic_block_no_relu, stride=stride))
        out_nhwc = jax.block_until_ready(fwd(x_nhwc, params))
        ref = ref_forward(x_nhwc, raw, stride)
        assert out_nhwc.shape == (N, H // stride, W // stride, Cout), out_nhwc.shape
        max_err = float(jnp.max(jnp.abs(out_nhwc - ref)))
        rel_err = float(jnp.linalg.norm(out_nhwc - ref) / jnp.linalg.norm(ref))
        # bf16 operands -> looser elementwise tolerance, tight relative-norm check.
        assert jnp.allclose(out_nhwc, ref, rtol=5e-2, atol=5e-2), (max_err, rel_err)
        assert rel_err < 2e-2, rel_err
        return out_nhwc

    # --- case 1: block with downsample (1x1 conv stride 2 + BN residual) ----
    N, Cin, H, W = 2, 4, 16, 16
    Cout = 8
    stride = 2
    ks = jax.random.split(key, 8)
    x_nchw = jax.random.normal(ks[0], (N, Cin, H, W), jnp.float32)
    raw_ds = {
        "w1": 0.1 * jax.random.normal(ks[1], (Cout, Cin, 3, 3), jnp.float32),
        "w2": 0.1 * jax.random.normal(ks[2], (Cout, Cout, 3, 3), jnp.float32),
        "wd": 0.1 * jax.random.normal(ks[3], (Cout, Cin, 1, 1), jnp.float32),
        "bn1": bn_params(ks[4], Cout),
        "bn2": bn_params(ks[5], Cout),
        "bnd": bn_params(ks[6], Cout),
    }
    x_nhwc = jnp.transpose(x_nchw, (0, 2, 3, 1))  # NCHW -> NHWC
    out_ds = check(raw_ds, x_nhwc, stride, N, H, W, Cout)

    # --- case 2: identity-residual block (stride 1, Cin == Cout) ------------
    Cid = 8
    ks2 = jax.random.split(jax.random.PRNGKey(1), 6)
    x2_nchw = jax.random.normal(ks2[0], (N, Cid, H, W), jnp.float32)
    raw_id = {
        "w1": 0.1 * jax.random.normal(ks2[1], (Cid, Cid, 3, 3), jnp.float32),
        "w2": 0.1 * jax.random.normal(ks2[2], (Cid, Cid, 3, 3), jnp.float32),
        "wd": None,
        "bn1": bn_params(ks2[3], Cid),
        "bn2": bn_params(ks2[4], Cid),
    }
    x2_nhwc = jnp.transpose(x2_nchw, (0, 2, 3, 1))
    out_id = check(raw_id, x2_nhwc, 1, N, H, W, Cid)

    # Back to PyTorch NCHW convention if a caller wants it.
    out_nchw = jnp.transpose(out_ds, (0, 3, 1, 2))
    jax.block_until_ready(out_nchw)
    print("KERNEL_OK")
</pallas_src>

<mosaic_0001>
module attributes {stable_mosaic.version = 11 : i64} {
  func.func @_fused_kernel(%arg0: i32, %arg1: i32, %arg2: memref<64x128xbf16, #tpu.memory_space<vmem>>, %arg3: memref<128x128xbf16, #tpu.memory_space<vmem>>, %arg4: memref<1x128xf32, #tpu.memory_space<vmem>>, %arg5: memref<64x128xbf16, #tpu.memory_space<vmem>>, %arg6: memref<64x128xf32, #tpu.memory_space<vmem>>) attributes {dimension_semantics = [#tpu.dimension_semantics<parallel>, #tpu.dimension_semantics<arbitrary>], iteration_bounds = array<i64: 2, 1>, scalar_prefetch = 0 : i64, scratch_operands = 1 : i64, tpu.core_type = #tpu.core_type<tc>, window_params = [{transform_indices = @transform_0, window_bounds = array<i64: 64, 128>}, {transform_indices = @transform_1, window_bounds = array<i64: 128, 128>}, {pipeline_mode = #tpu.pipeline_mode<synchronous>, transform_indices = @transform_2, window_bounds = array<i64: 1, 128>}, {transform_indices = @transform_3, window_bounds = array<i64: 64, 128>}]} {
    %c0_i32 = arith.constant 0 : i32
    %0 = arith.cmpi eq, %arg1, %c0_i32 : i32
    %1 = arith.extui %0 : i1 to i32
    %c0_i32_0 = arith.constant 0 : i32
    %2 = arith.cmpi ne, %1, %c0_i32_0 : i32
    scf.if %2 {
      %c0_10 = arith.constant 0 : index
      %c0_11 = arith.constant 0 : index
      %12 = vector.load %arg4[%c0_10, %c0_11] : memref<1x128xf32, #tpu.memory_space<vmem>>, vector<1x128xf32>
      %13 = vector.shape_cast %12 : vector<1x128xf32> to vector<1x128xf32>
      %14 = vector.broadcast %13 : vector<1x128xf32> to vector<64x128xf32>
      %c0_12 = arith.constant 0 : index
      %c0_13 = arith.constant 0 : index
      %15 = vector.load %arg6[%c0_12, %c0_13] : memref<64x128xf32, #tpu.memory_space<vmem>>, vector<64x128xf32>
      tpu.vector_store %arg6[%c0_12, %c0_13], %14 {strides = array<i32>} : memref<64x128xf32, #tpu.memory_space<vmem>>, vector<64x128xf32>,
    } else {
    }
    %c0 = arith.constant 0 : index
    %c0_1 = arith.constant 0 : index
    %3 = vector.load %arg6[%c0, %c0_1] : memref<64x128xf32, #tpu.memory_space<vmem>>, vector<64x128xf32>
    %c0_2 = arith.constant 0 : index
    %c0_3 = arith.constant 0 : index
    %4 = vector.load %arg2[%c0_2, %c0_3] : memref<64x128xbf16, #tpu.memory_space<vmem>>, vector<64x128xbf16>
    %c0_4 = arith.constant 0 : index
    %c0_5 = arith.constant 0 : index
    %5 = vector.load %arg3[%c0_4, %c0_5] : memref<128x128xbf16, #tpu.memory_space<vmem>>, vector<128x128xbf16>
    %cst = arith.constant dense<0.000000e+00> : vector<64x128xf32>
    %6 = tpu.matmul %4, %5, %cst {dimension_numbers = #tpu.dot_dimension_numbers<[1], [0], [0], [1], [0, 0, 1, 1], [], []>} : vector<64x128xbf16>, vector<128x128xbf16>, vector<64x128xf32> -> vector<64x128xf32>
    %7 = arith.addf %3, %6 : vector<64x128xf32>
    %c0_6 = arith.constant 0 : index
    %c0_7 = arith.constant 0 : index
    %8 = vector.load %arg6[%c0_6, %c0_7] : memref<64x128xf32, #tpu.memory_space<vmem>>, vector<64x128xf32>
    tpu.vector_store %arg6[%c0_6, %c0_7], %7 {strides = array<i32>} : memref<64x128xf32, #tpu.memory_space<vmem>>, vector<64x128xf32>,
    %c0_i32_8 = arith.constant 0 : i32
    %9 = arith.cmpi eq, %arg1, %c0_i32_8 : i32
    %10 = arith.extui %9 : i1 to i32
    %c0_i32_9 = arith.constant 0 : i32
    %11 = arith.cmpi ne, %10, %c0_i32_9 : i32
    scf.if %11 {
      %c0_10 = arith.constant 0 : index
      %c0_11 = arith.constant 0 : index
      %12 = vector.load %arg6[%c0_10, %c0_11] : memref<64x128xf32, #tpu.memory_space<vmem>>, vector<64x128xf32>
      %cst_12 = arith.constant 0.000000e+00 : f32
      %13 = vector.broadcast %cst_12 : f32 to vector<64x128xf32>
      %14 = arith.maximumf %12, %13 : vector<64x128xf32>
      %15 = arith.truncf %14 : vector<64x128xf32> to vector<64x128xbf16>
      %c0_13 = arith.constant 0 : index
      %c0_14 = arith.constant 0 : index
      %16 = vector.load %arg5[%c0_13, %c0_14] : memref<64x128xbf16, #tpu.memory_space<vmem>>, vector<64x128xbf16>
      tpu.vector_store %arg5[%c0_13, %c0_14], %15 {strides = array<i32>} : memref<64x128xbf16, #tpu.memory_space<vmem>>, vector<64x128xbf16>,
    } else {
    }
    return
  }
  func.func @transform_0(%arg0: i32, %arg1: i32) -> (i32, i32) {
    %c0_i32 = arith.constant 0 : i32
    return %arg0, %arg1 : i32, i32
  }
  func.func @transform_1(%arg0: i32, %arg1: i32) -> (i32, i32) {
    %c0_i32 = arith.constant 0 : i32
    %c0_i32_0 = arith.constant 0 : i32
    return %arg1, %c0_i32 : i32, i32
  }
  func.func @transform_2(%arg0: i32, %arg1: i32) -> (i32, i32) {
    %c0_i32 = arith.constant 0 : i32
    %c0_i32_0 = arith.constant 0 : i32
    %c0_i32_1 = arith.constant 0 : i32
    return %c0_i32, %c0_i32_0 : i32, i32
  }
  func.func @transform_3(%arg0: i32, %arg1: i32) -> (i32, i32) {
    %c0_i32 = arith.constant 0 : i32
    %c0_i32_0 = arith.constant 0 : i32
    return %arg0, %c0_i32 : i32, i32
  }
}

module attributes {stable_mosaic.version = 11 : i64} {
  func.func @_fused_kernel(%arg0: i32, %arg1: i32, %arg2: memref<64x128xbf16, #tpu.memory_space<vmem>>, %arg3: memref<128x128xbf16, #tpu.memory_space<vmem>>, %arg4: memref<1x128xf32, #tpu.memory_space<vmem>>, %arg5: memref<64x128xbf16, #tpu.memory_space<vmem>>, %arg6: memref<128x128xbf16, #tpu.memory_space<vmem>>, %arg7: memref<1x128xf32, #tpu.memory_space<vmem>>, %arg8: memref<64x128xf32, #tpu.memory_space<vmem>>, %arg9: memref<64x128xf32, #tpu.memory_space<vmem>>) attributes {dimension_semantics = [#tpu.dimension_semantics<parallel>, #tpu.dimension_semantics<arbitrary>], iteration_bounds = array<i64: 2, 1>, scalar_prefetch = 0 : i64, scratch_operands = 1 : i64, tpu.core_type = #tpu.core_type<tc>, window_params = [{transform_indices = @transform_0, window_bounds = array<i64: 64, 128>}, {transform_indices = @transform_1, window_bounds = array<i64: 128, 128>}, {pipeline_mode = #tpu.pipeline_mode<synchronous>, transform_indices = @transform_2, window_bounds = array<i64: 1, 128>}, {transform_indices = @transform_3, window_bounds = array<i64: 64, 128>}, {pipeline_mode = #tpu.pipeline_mode<synchronous>, transform_indices = @transform_4, window_bounds = array<i64: 128, 128>}, {pipeline_mode = #tpu.pipeline_mode<synchronous>, transform_indices = @transform_5, window_bounds = array<i64: 1, 128>}, {transform_indices = @transform_6, window_bounds = array<i64: 64, 128>}]} {
    %c0_i32 = arith.constant 0 : i32
    %0 = arith.cmpi eq, %arg1, %c0_i32 : i32
    %1 = arith.extui %0 : i1 to i32
    %c0_i32_0 = arith.constant 0 : i32
    %2 = arith.cmpi ne, %1, %c0_i32_0 : i32
    scf.if %2 {
      %c0_10 = arith.constant 0 : index
      %c0_11 = arith.constant 0 : index
      %12 = vector.load %arg4[%c0_10, %c0_11] : memref<1x128xf32, #tpu.memory_space<vmem>>, vector<1x128xf32>
      %13 = vector.shape_cast %12 : vector<1x128xf32> to vector<1x128xf32>
      %14 = vector.broadcast %13 : vector<1x128xf32> to vector<64x128xf32>
      %c0_12 = arith.constant 0 : index
      %c0_13 = arith.constant 0 : index
      %15 = vector.load %arg9[%c0_12, %c0_13] : memref<64x128xf32, #tpu.memory_space<vmem>>, vector<64x128xf32>
      tpu.vector_store %arg9[%c0_12, %c0_13], %14 {strides = array<i32>} : memref<64x128xf32, #tpu.memory_space<vmem>>, vector<64x128xf32>,
    } else {
    }
    %c0 = arith.constant 0 : index
    %c0_1 = arith.constant 0 : index
    %3 = vector.load %arg9[%c0, %c0_1] : memref<64x128xf32, #tpu.memory_space<vmem>>, vector<64x128xf32>
    %c0_2 = arith.constant 0 : index
    %c0_3 = arith.constant 0 : index
    %4 = vector.load %arg2[%c0_2, %c0_3] : memref<64x128xbf16, #tpu.memory_space<vmem>>, vector<64x128xbf16>
    %c0_4 = arith.constant 0 : index
    %c0_5 = arith.constant 0 : index
    %5 = vector.load %arg3[%c0_4, %c0_5] : memref<128x128xbf16, #tpu.memory_space<vmem>>, vector<128x128xbf16>
    %cst = arith.constant dense<0.000000e+00> : vector<64x128xf32>
    %6 = tpu.matmul %4, %5, %cst {dimension_numbers = #tpu.dot_dimension_numbers<[1], [0], [0], [1], [0, 0, 1, 1], [], []>} : vector<64x128xbf16>, vector<128x128xbf16>, vector<64x128xf32> -> vector<64x128xf32>
    %7 = arith.addf %3, %6 : vector<64x128xf32>
    %c0_6 = arith.constant 0 : index
    %c0_7 = arith.constant 0 : index
    %8 = vector.load %arg9[%c0_6, %c0_7] : memref<64x128xf32, #tpu.memory_space<vmem>>, vector<64x128xf32>
    tpu.vector_store %arg9[%c0_6, %c0_7], %7 {strides = array<i32>} : memref<64x128xf32, #tpu.memory_space<vmem>>, vector<64x128xf32>,
    %c0_i32_8 = arith.constant 0 : i32
    %9 = arith.cmpi eq, %arg1, %c0_i32_8 : i32
    %10 = arith.extui %9 : i1 to i32
    %c0_i32_9 = arith.constant 0 : i32
    %11 = arith.cmpi ne, %10, %c0_i32_9 : i32
    scf.if %11 {
      %c0_10 = arith.constant 0 : index
      %c0_11 = arith.constant 0 : index
      %12 = vector.load %arg9[%c0_10, %c0_11] : memref<64x128xf32, #tpu.memory_space<vmem>>, vector<64x128xf32>
      %c0_12 = arith.constant 0 : index
      %c0_13 = arith.constant 0 : index
      %13 = vector.load %arg5[%c0_12, %c0_13] : memref<64x128xbf16, #tpu.memory_space<vmem>>, vector<64x128xbf16>
      %c0_14 = arith.constant 0 : index
      %c0_15 = arith.constant 0 : index
      %14 = vector.load %arg6[%c0_14, %c0_15] : memref<128x128xbf16, #tpu.memory_space<vmem>>, vector<128x128xbf16>
      %cst_16 = arith.constant dense<0.000000e+00> : vector<64x128xf32>
      %15 = tpu.matmul %13, %14, %cst_16 {dimension_numbers = #tpu.dot_dimension_numbers<[1], [0], [0], [1], [0, 0, 1, 1], [], []>} : vector<64x128xbf16>, vector<128x128xbf16>, vector<64x128xf32> -> vector<64x128xf32>
      %c0_17 = arith.constant 0 : index
      %c0_18 = arith.constant 0 : index
      %16 = vector.load %arg7[%c0_17, %c0_18] : memref<1x128xf32, #tpu.memory_space<vmem>>, vector<1x128xf32>
      %17 = vector.broadcast %16 : vector<1x128xf32> to vector<64x128xf32>
      %18 = arith.addf %15, %17 : vector<64x128xf32>
      %19 = arith.addf %12, %18 : vector<64x128xf32>
      %c0_19 = arith.constant 0 : index
      %c0_20 = arith.constant 0 : index
      %20 = vector.load %arg8[%c0_19, %c0_20] : memref<64x128xf32, #tpu.memory_space<vmem>>, vector<64x128xf32>
      tpu.vector_store %arg8[%c0_19, %c0_20], %19 {strides = array<i32>} : memref<64x128xf32, #tpu.memory_space<vmem>>, vector<64x128xf32>,
    } else {
    }
    return
  }
  func.func @transform_0(%arg0: i32, %arg1: i32) -> (i32, i32) {
    %c0_i32 = arith.constant 0 : i32
    return %arg0, %arg1 : i32, i32
  }
  func.func @transform_1(%arg0: i32, %arg1: i32) -> (i32, i32) {
    %c0_i32 = arith.constant 0 : i32
    %c0_i32_0 = arith.constant 0 : i32
    return %arg1, %c0_i32 : i32, i32
  }
  func.func @transform_2(%arg0: i32, %arg1: i32) -> (i32, i32) {
    %c0_i32 = arith.constant 0 : i32
    %c0_i32_0 = arith.constant 0 : i32
    %c0_i32_1 = arith.constant 0 : i32
    return %c0_i32, %c0_i32_0 : i32, i32
  }
  func.func @transform_3(%arg0: i32, %arg1: i32) -> (i32, i32) {
    %c0_i32 = arith.constant 0 : i32
    %c0_i32_0 = arith.constant 0 : i32
    return %arg0, %c0_i32 : i32, i32
  }
  func.func @transform_4(%arg0: i32, %arg1: i32) -> (i32, i32) {
    %c0_i32 = arith.constant 0 : i32
    %c0_i32_0 = arith.constant 0 : i32
    %c0_i32_1 = arith.constant 0 : i32
    return %c0_i32, %c0_i32_0 : i32, i32
  }
  func.func @transform_5(%arg0: i32, %arg1: i32) -> (i32, i32) {
    %c0_i32 = arith.constant 0 : i32
    %c0_i32_0 = arith.constant 0 : i32
    %c0_i32_1 = arith.constant 0 : i32
    return %c0_i32, %c0_i32_0 : i32, i32
  }
  func.func @transform_6(%arg0: i32, %arg1: i32) -> (i32, i32) {
    %c0_i32 = arith.constant 0 : i32
    %c0_i32_0 = arith.constant 0 : i32
    return %arg0, %c0_i32 : i32, i32
  }
}

</mosaic_0001>

<bundles_post_ra>
// kernel: basic_block_no_relu.2
= control target key start
LH: loop header
LB: loop body
LE: loop exit
PB: predicated region body
PF: predicated region fallthrough
CT: control target
= control target key end

     0   :  { %s762_s12 = smov 0   ;;  %s764_s13 = smov 0   ;;  %s835_s0 = inlined_call_operand.vmem [shape: bf16[128,128], index: 0, kind: input, shape index: {}]   ;;  %s836_s1 = inlined_call_operand.vmem [shape: bf16[128,128], index: 1, kind: input, shape index: {}]   ;;  %s837_s2 = inlined_call_operand.vmem [shape: f32[1,128], index: 2, kind: input, shape index: {}]   ;;  %s838_s3 = inlined_call_operand.vmem [shape: bf16[128,128], index: 3, kind: output, shape index: {}]  }
   0x1   :  { %s766_s14 = smov 0  }
   0x2 LB: > { %s25_s15 = sadd.s32 1, %s736_s13  ;;  %p571_p0 = scmp.ge.s32.totalorder %s740_s14, 1  ;;  %s740_s14 = sphi %s766_s14, %s13_s14   ;;  %s736_s13 = sphi %s764_s13, %s840_s13   ;;  %s732_s12 = sphi %s762_s12, %s839_s12  }
   0x3   : > { %p27_p1 = scmp.ge.s32.totalorder %s25_s15, 2  ;;  %p166_p2 = scmp.lt.s32.totalorder %s740_s14, 3 }
   0x5   : > { %s842_s15 = smov (%p27_p1, %s25_s15), 0  ;;  %p167_p3 = pnand %p571_p0, %p166_p2 }
   0x6   : > { %s572_s18 = sshll.u32 (!%p167_p3), %s732_s12, 3 }
   0x7   : > { %170 = sbr.rel (%p167_p3) target bundleno = 251 (0xfb), region = 32  ;;  %p199_p4 = scmp.lt.s32.totalorder (!%p167_p3), %s572_s18, 15 }
   0xc   : > { %v706_v0 = vld [vmem:[%s836_s1 + $0x38] sm:$0xff]   ;;  %v707_v1 = vld [vmem:[%s836_s1 + $0x30] sm:$0xff]   ;;  %s844_s18 = smov (!%p199_p4, %s572_s18), 15  ;;  %v708_v2 = vld [vmem:[%s836_s1 + $0x28] sm:$0xff]  }
   0xd   : > { %642 = vmatprep.subr.bf16.mxu0 %v706_v0  ;;  %666 = vmatprep.subr.bf16.mxu1 %v706_v0  ;;  %s573_s23 = sshll.u32 %s844_s18, 2  ;;  %v709_v3 = vld [vmem:[%s836_s1 + $0x20] sm:$0xff]   ;;  %v710_v6 = vld [vmem:[%s836_s1 + $0x18] sm:$0xff]   ;;  %v711_v7 = vld [vmem:[%s836_s1 + $0x10] sm:$0xff]  }
   0xe   : > { %643 = vmatpush3.bf16.msra.mxu0 %v706_v0  ;;  %674 = vmatpush3.bf16.msra.mxu1 %v706_v0  ;;  %s797_s26 = scalar_lea.vmem %s835_s0, %s573_s23  ;;  %v712_v8 = vld [vmem:[%s836_s1 + $0x8] sm:$0xff]   ;;  %v713_v9 = vld [vmem:[%s836_s1] sm:$0xff]   ;;  %s217_s17 = scalar_lea.vmem %s838_s3, %s573_s23 }
   0xf   : > { %644 = vmatprep.subr.bf16.mxu0 %v707_v1  ;;  %667 = vmatprep.subr.bf16.mxu1 %v707_v1  ;;  %v714_v4 = vld [vmem:[%s797_s26] sm:$0xff]   ;;  %v715_v5 = vld [vmem:[%s797_s26 + $0x10] sm:$0xff]   ;;  %v716_v10 = vld [vmem:[%s797_s26 + $0x8] sm:$0xff]  }
  0x10   : > { %658 = vmatprep.mubr.bf16.mxu0 %v714_v4  ;;  %662 = vmatprep.mubr.bf16.mxu1 %v715_v5  ;;  %v717_v11 = vld [vmem:[%s797_s26 + $0x18] sm:$0xff]   ;;  %v576_v12 = vld [vmem:[%s837_s2] ss:$0 sm:$0xff] }
  0x12   : > { %645 = vmatpush3.bf16.msra.mxu0 %v707_v1  ;;  %675 = vmatpush3.bf16.msra.mxu1 %v707_v1 }
  0x13   : > { %646 = vmatprep.subr.bf16.mxu0 %v708_v2  ;;  %668 = vmatprep.subr.bf16.mxu1 %v708_v2 }
  0x16   : > { %647 = vmatpush3.bf16.msra.mxu0 %v708_v2  ;;  %676 = vmatpush3.bf16.msra.mxu1 %v708_v2 }
  0x17   : > { %648 = vmatprep.subr.bf16.mxu0 %v709_v3  ;;  %669 = vmatprep.subr.bf16.mxu1 %v709_v3 }
  0x1a   : > { %649 = vmatpush3.bf16.msra.mxu0 %v709_v3  ;;  %677 = vmatpush3.bf16.msra.mxu1 %v709_v3 }
  0x1b   : > { %650 = vmatprep.subr.bf16.mxu0 %v710_v6  ;;  %670 = vmatprep.subr.bf16.mxu1 %v710_v6 }
  0x1e   : > { %651 = vmatpush3.bf16.msra.mxu0 %v710_v6  ;;  %678 = vmatpush3.bf16.msra.mxu1 %v710_v6 }
  0x1f   : > { %652 = vmatprep.subr.bf16.mxu0 %v711_v7  ;;  %671 = vmatprep.subr.bf16.mxu1 %v711_v7 }
  0x22   : > { %653 = vmatpush3.bf16.msra.mxu0 %v711_v7  ;;  %679 = vmatpush3.bf16.msra.mxu1 %v711_v7 }
  0x23   : > { %654 = vmatprep.subr.bf16.mxu0 %v712_v8  ;;  %672 = vmatprep.subr.bf16.mxu1 %v712_v8 }
  0x26   : > { %655 = vmatpush3.bf16.msra.mxu0 %v712_v8  ;;  %680 = vmatpush3.bf16.msra.mxu1 %v712_v8 }
  0x27   : > { %656 = vmatprep.subr.bf16.mxu0 %v713_v9  ;;  %673 = vmatprep.subr.bf16.mxu1 %v713_v9 }
  0x2a   : > { %657 = vmatpush3.bf16.msra.mxu0 %v713_v9  ;;  %681 = vmatpush3.bf16.msra.mxu1 %v713_v9 }
  0x2d   : > { %659 = vmatmul.mubr.bf16.vlgmr.msra.gmra.mxu0 %v716_v10  ;;  %663 = vmatmul.mubr.bf16.vlgmr.msra.gmra.mxu1 %v717_v11 }
  0xed   : > { %v660_v13 = vpop.f32.mrf.mxu0  ;;  %v664_v14 = vpop.f32.mrf.mxu1 }
  0xee   : > { %v410_v15 = vadd.f32 %v660_v13, %v576_v12  ;;  %v414_v16 = vadd.f32 %v664_v14, %v576_v12 }
  0xef   : > { %v377_v17 = vpop.f32.mrf.mxu0  ;;  %v393_v18 = vpop.f32.mrf.mxu1 }
  0xf0   : > { %v408_v19 = vadd.f32 %v576_v12, %v377_v17  ;;  %v412_v20 = vadd.f32 %v576_v12, %v393_v18  ;;  %v437_v25 = vmax.f32 %v410_v15, 0.0  ;;  %v441_v26 = vmax.f32 %v414_v16, 0.0 }
  0xf1   : > { %v661_v21 = vpop.f32.mrf.mxu0  ;;  %v665_v22 = vpop.f32.mrf.mxu1 }
  0xf2   : > { %v411_v23 = vadd.f32 %v661_v21, %v576_v12  ;;  %v415_v24 = vadd.f32 %v665_v22, %v576_v12  ;;  %v435_v33 = vmax.f32 %v408_v19, 0.0  ;;  %v439_v34 = vmax.f32 %v412_v20, 0.0 }
  0xf3   : > { %v380_v27 = vpop.f32.mrf.mxu0  ;;  %v396_v28 = vpop.f32.mrf.mxu1 }
  0xf4   : > { %v438_v29 = vmax.f32 %v411_v23, 0.0  ;;  %v442_v30 = vmax.f32 %v415_v24, 0.0  ;;  %v409_v31 = vadd.f32 %v576_v12, %v380_v27  ;;  %v413_v32 = vadd.f32 %v576_v12, %v396_v28 }
  0xf6   : > { %v615_v35 = vpack.c.bf16 %v438_v29, %v437_v25  ;;  %v625_v36 = vpack.c.bf16 %v442_v30, %v441_v26  ;;  %v436_v37 = vmax.f32 %v409_v31, 0.0  ;;  %v440_v38 = vmax.f32 %v413_v32, 0.0 }
  0xf8   : > { %627 = vst [vmem:[%s217_s17 + $0x8] sm:$0xff] %v615_v35   ;;  %629 = vst [vmem:[%s217_s17 + $0x18] sm:$0xff] %v625_v36   ;;  %v610_v39 = vpack.c.bf16 %v436_v37, %v435_v33  ;;  %v620_v40 = vpack.c.bf16 %v440_v38, %v439_v34 }
  0xfa   : > { %611 = vst [vmem:[%s217_s17] sm:$0xff] %v610_v39   ;;  %628 = vst [vmem:[%s217_s17 + $0x10] sm:$0xff] %v620_v40  }
  0xfb PF: > { %s13_s14 = sadd.s32 1, %s740_s14   ;;  %s839_s12 = smov %s736_s13 }
  0xfc   : > { %p10_p5 = scmp.ge.s32.totalorder %s13_s14, 4   ;;  %s840_s13 = smov %s842_s15 }
  0xfe   :  { %12 = sbr.rel (!%p10_p5) target bundleno = 2 (0x2), region = 73 }

// kernel: basic_block_no_relu.3
= control target key start
LH: loop header
LB: loop body
LE: loop exit
PB: predicated region body
PF: predicated region fallthrough
CT: control target
= control target key end

     0   :  { %11 = vsyncpa [#allocation4], 0  ;;  %s1343_s0 = inlined_call_operand.vmem [shape: bf16[128,128], index: 0, kind: input, shape index: {}]   ;;  %s1344_s1 = inlined_call_operand.vmem [shape: bf16[128,128], index: 1, kind: input, shape index: {}]   ;;  %s1345_s2 = inlined_call_operand.vmem [shape: f32[1,128], index: 2, kind: input, shape index: {}]   ;;  %s1346_s3 = inlined_call_operand.vmem [shape: bf16[128,128], index: 3, kind: input, shape index: {}]   ;;  %s1347_s4 = inlined_call_operand.vmem [shape: bf16[128,128], index: 4, kind: input, shape index: {}]   ;;  %s1348_s5 = inlined_call_operand.vmem [shape: f32[1,128], index: 5, kind: input, shape index: {}]   ;;  %s1349_s6 = inlined_call_operand.hbm [shape: f32[128,128], index: 6, kind: output, shape index: {}]  }
   0x1   :  { %13 = vsyncpa [#allocation4 + $0x1], 0  ;;  %s1146_s21 = smov 0   ;;  %s1148_s22 = smov 0  }
   0x2   :  { %s1150_s23 = smov 0   ;;  %s1152_s24 = smov 0  }
   0x3   :  { %s1154_s25 = smov 0   ;;  %s1156_s26 = smov 0  }
   0x4 LB: > { %s834_s27 = sadd.s32 4294967295, %s1106_s26   ;;  %s835_s28 = sadd.s32 4294967294, %s1106_s26   ;;  %s1106_s26 = sphi %s1156_s26, %s19_s26   ;;  %s1102_s25 = sphi %s1154_s25, %s1356_s25   ;;  %s1098_s24 = sphi %s1152_s24, %s1355_s24   ;;  %s1094_s23 = sphi %s1150_s23, %s1354_s23   ;;  %s1090_s22 = sphi %s1148_s22, %s1353_s22   ;;  %s1086_s21 = sphi %s1146_s21, %s1352_s21  }
   0x5   : > { %s31_s29 = sadd.s32 1, %s1102_s25  ;;  %s181_s30 = sadd.s32 1, %s1094_s23 }
   0x6   : > { %p33_p0 = scmp.ge.s32.totalorder %s31_s29, 2  ;;  %p191_p1 = scmp.ne.s32.totalorder %s1094_s23, %s1090_s22 }
   0x7   : > { %p192_p2 = scmp.eq.s32.totalorder %s834_s27, 1  ;;  %p197_p3 = scmp.ne.s32.totalorder %s1090_s22, %s1086_s21 }
   0x8   : > { %s1358_s29 = smov (%p33_p0, %s31_s29), 0  ;;  %p198_p5 = scmp.eq.s32.totalorder %s835_s28, 1 }
   0x9   : > { %p1186_p4 = por %p192_p2, %p191_p1  ;;  %s178_s8 = ssub.s32 %s1102_s25, %s1358_s29 }
   0xa   : > { %p839_p6 = scmp.ge.s32.totalorder %s1106_s26, 1  ;;  %p179_p7 = scmp.eq.s32.totalorder %s178_s8, 0 }
   0xb   : > { %p1193_p8 = por %p198_p5, %p197_p3  ;;  %p255_p9 = scmp.lt.s32.totalorder %s1106_s26, 3 }
   0xc   : > { %s1199_s10 = scalar_select %p179_p7, %s1094_s23, %s181_s30  }
   0xd   : > { %p256_p10 = pnand %p839_p6, %p255_p9 }
   0xe   : > { %s841_s13 = sshll.u32 (!%p256_p10), %s1098_s24, 3  ;;  %s1108_s8 = smov (!%p256_p10), [#allocation3]  }
   0xf   : > { %259 = sbr.rel (%p256_p10) target bundleno = 279 (0x117), region = 44  ;;  %p299_p11 = scmp.lt.s32.totalorder (!%p256_p10), %s841_s13, 15 }
  0x10   : > { %s1034_s11 = sshll.u32 (!%p256_p10), %s1108_s8, 4  ;;  %s1035_s11 = int_to_ptr.vmem [resolvable:$false] %s1034_s11 }
  0x11   : > { %s1036_s14 = scalar_lea.vmem (!%p256_p10), %s1035_s11, 2048 }
  0x14   : > { %v1006_v0 = vld [vmem:[%s1344_s1 + $0x38] sm:$0xff]   ;;  %v1008_v2 = vld [vmem:[%s1344_s1 + $0x30] sm:$0xff]   ;;  %v1010_v4 = vld [vmem:[%s1344_s1 + $0x28] sm:$0xff]   ;;  %s1360_s13 = smov (!%p299_p11, %s841_s13), 15 }
  0x15   : > { %v1007_v1 = vld [vmem:[%s1347_s4 + $0x38] sm:$0xff]   ;;  %901 = vmatprep.subr.bf16.mxu0 %v1006_v0  ;;  %v1009_v3 = vld [vmem:[%s1347_s4 + $0x30] sm:$0xff]   ;;  %v1011_v5 = vld [vmem:[%s1347_s4 + $0x28] sm:$0xff]   ;;  %s842_s15 = sshll.u32 %s1360_s13, 2  ;;  %s295_s13 = sand.u32 1, %s1090_s22  }
  0x16   : > { %925 = vmatprep.subr.bf16.mxu1 %v1007_v1  ;;  %902 = vmatpush3.bf16.msra.mxu0 %v1006_v0  ;;  %v1012_v6 = vld [vmem:[%s1344_s1 + $0x20] sm:$0xff]   ;;  %v1014_v8 = vld [vmem:[%s1344_s1 + $0x18] sm:$0xff]   ;;  %s1235_s28 = scalar_lea.vmem %s1343_s0, %s842_s15  ;;  %v1016_v10 = vld [vmem:[%s1344_s1 + $0x10] sm:$0xff]   ;;  %s1243_s12 = scalar_lea.vmem %s1346_s3, %s842_s15 }
  0x17   : > { %926 = vmatpush3.bf16.msra.mxu1 %v1007_v1  ;;  %903 = vmatprep.subr.bf16.mxu0 %v1008_v2  ;;  %v1013_v7 = vld [vmem:[%s1347_s4 + $0x20] sm:$0xff]   ;;  %v1015_v9 = vld [vmem:[%s1347_s4 + $0x18] sm:$0xff]   ;;  %v1017_v11 = vld [vmem:[%s1347_s4 + $0x10] sm:$0xff]   ;;  %s840_s15 = sshll.u32 %s295_s13, 6 }
  0x18   : > { %927 = vmatprep.subr.bf16.mxu1 %v1009_v3  ;;  %v1022_v12 = vld [vmem:[%s1235_s28] sm:$0xff]   ;;  %v1018_v14 = vld [vmem:[%s1344_s1 + $0x8] sm:$0xff]   ;;  %v1026_v20 = vld [vmem:[%s1235_s28 + $0x10] sm:$0xff]  }
  0x19   : > { %v1023_v13 = vld [vmem:[%s1243_s12] sm:$0xff]   ;;  %917 = vmatprep.mubr.bf16.mxu0 %v1022_v12  ;;  %v1019_v15 = vld [vmem:[%s1347_s4 + $0x8] sm:$0xff]   ;;  %v1027_v21 = vld [vmem:[%s1243_s12 + $0x10] sm:$0xff]  }
  0x1a   : > { %904 = vmatpush3.bf16.msra.mxu0 %v1008_v2  ;;  %941 = vmatprep.mubr.bf16.mxu1 %v1023_v13  ;;  %v1020_v16 = vld [vmem:[%s1344_s1] sm:$0xff]   ;;  %v1024_v18 = vld [vmem:[%s1235_s28 + $0x8] sm:$0xff]   ;;  %v1028_v22 = vld [vmem:[%s1235_s28 + $0x18] sm:$0xff]   ;;  %s1277_s28 = scalar_lea.vmem [#allocation3], %s840_s15 }
  0x1b   : > { %928 = vmatpush3.bf16.msra.mxu1 %v1009_v3  ;;  %905 = vmatprep.subr.bf16.mxu0 %v1010_v4  ;;  %v1021_v17 = vld [vmem:[%s1347_s4] sm:$0xff]   ;;  %v1025_v19 = vld [vmem:[%s1243_s12 + $0x8] sm:$0xff]   ;;  %v1029_v23 = vld [vmem:[%s1243_s12 + $0x18] sm:$0xff]   ;;  %s876_s12 = sshll.u32 %s1098_s24, 10  ;;  %s734_s18 = sshll.u32 %s1277_s28, 4  ;;  %s1292_s18 = int_to_ptr.vmem [resolvable:$true] %s734_s18 }
  0x1c   : > { %929 = vmatprep.subr.bf16.mxu1 %v1011_v5  ;;  %v845_v24 = vld [vmem:[%s1345_s2] ss:$0 sm:$0xff]  ;;  %s1290_s27 = scalar_lea.hbm %s1349_s6, %s876_s12  ;;  %s1298_s24 = scalar_lea.sflag [#allocation4], %s295_s13 }
  0x1d   : > { %v858_v25 = vld [vmem:[%s1348_s5] ss:$0 sm:$0xff]  ;;  %s1030_s30 = scalar_lea.vmem %s1292_s18, 1024  ;;  %p1037_p1 = scmp.lt.s32.totalorder %s1292_s18, %s1035_s11 }
  0x1e   : > { %906 = vmatpush3.bf16.msra.mxu0 %v1010_v4  ;;  %p1031_p12 = scmp.ne.s32.totalorder %s1292_s18, %s1030_s30  ;;  %p1038_p2 = scmp.lt.s32.totalorder %s1036_s14, %s1030_s30 }
  0x1f   : > { %930 = vmatpush3.bf16.msra.mxu1 %v1011_v5  ;;  %907 = vmatprep.subr.bf16.mxu0 %v1012_v6 }
  0x20   : > { %931 = vmatprep.subr.bf16.mxu1 %v1013_v7  ;;  %p1032_p13 = pnand %p1031_p12, %p1186_p4  ;;  %p1039_p3 = por %p1038_p2, %p1037_p1 }
  0x22   : > { %908 = vmatpush3.bf16.msra.mxu0 %v1012_v6  ;;  %p1033_p0 = pneg %p1032_p13 }
  0x23   : > { %932 = vmatpush3.bf16.msra.mxu1 %v1013_v7  ;;  %909 = vmatprep.subr.bf16.mxu0 %v1014_v8 }
  0x24   : > { %933 = vmatprep.subr.bf16.mxu1 %v1015_v9  ;;  %p1040_p5 = pnand %p1039_p3, %p1033_p0 }
  0x26   : > { %910 = vmatpush3.bf16.msra.mxu0 %v1014_v8 }
  0x27   : > { %934 = vmatpush3.bf16.msra.mxu1 %v1015_v9  ;;  %911 = vmatprep.subr.bf16.mxu0 %v1016_v10 }
  0x28   : > { %935 = vmatprep.subr.bf16.mxu1 %v1017_v11 }
  0x2a   : > { %912 = vmatpush3.bf16.msra.mxu0 %v1016_v10 }
  0x2b   : > { %936 = vmatpush3.bf16.msra.mxu1 %v1017_v11  ;;  %913 = vmatprep.subr.bf16.mxu0 %v1018_v14 }
  0x2c   : > { %937 = vmatprep.subr.bf16.mxu1 %v1019_v15 }
  0x2e   : > { %914 = vmatpush3.bf16.msra.mxu0 %v1018_v14 }
  0x2f   : > { %938 = vmatpush3.bf16.msra.mxu1 %v1019_v15  ;;  %915 = vmatprep.subr.bf16.mxu0 %v1020_v16 }
  0x30   : > { %939 = vmatprep.subr.bf16.mxu1 %v1021_v17 }
  0x32   : > { %916 = vmatpush3.bf16.msra.mxu0 %v1020_v16 }
  0x33   : > { %940 = vmatpush3.bf16.msra.mxu1 %v1021_v17 }
  0x35   : > { %918 = vmatmul.mubr.bf16.vlgmr.msra.gmra.mxu0 %v1024_v18 }
  0x36   : > { %942 = vmatmul.mubr.bf16.vlgmr.msra.gmra.mxu1 %v1025_v19  ;;  %921 = vmatprep.mubr.bf16.mxu0 %v1026_v20 }
  0x37   : > { %945 = vmatprep.mubr.bf16.mxu1 %v1027_v21 }
  0x3d   : > { %922 = vmatmul.mubr.bf16.gmra.mxu0 %v1028_v22 }
  0x3e   : > { %946 = vmatmul.mubr.bf16.gmra.mxu1 %v1029_v23 }
  0xf5   : > { %v919_v26 = vpop.f32.mrf.mxu0 }
  0xf6   : > { %v511_v27 = vadd.f32 %v919_v26, %v845_v24  ;;  %v943_v28 = vpop.f32.mrf.mxu1 }
  0xf7   : > { %v682_v29 = vadd.f32 %v943_v28, %v858_v25  ;;  %v478_v30 = vpop.f32.mrf.mxu0 }
  0xf8   : > { %v509_v31 = vadd.f32 %v845_v24, %v478_v30  ;;  %v673_v32 = vpop.f32.mrf.mxu1 }
  0xf9   : > { %v706_v33 = vadd.f32 %v682_v29, %v511_v27  ;;  %v674_v34 = vadd.f32 %v858_v25, %v673_v32  ;;  %v920_v35 = vpop.f32.mrf.mxu0 }
  0xfa   : > { %v512_v36 = vadd.f32 %v920_v35, %v845_v24  ;;  %v944_v37 = vpop.f32.mrf.mxu1 }
  0xfb   : > { %714 = vst [vmem:[%s1277_s28 + $0x10] sm:$0xff] %v706_v33  ;;  %v704_v38 = vadd.f32 %v674_v34, %v509_v31  ;;  %v685_v39 = vadd.f32 %v944_v37, %v858_v25  ;;  %v481_v40 = vpop.f32.mrf.mxu0 }
  0xfc   : > { %v510_v41 = vadd.f32 %v845_v24, %v481_v40  ;;  %v676_v42 = vpop.f32.mrf.mxu1 }
  0xfd   : > { %712 = vst [vmem:[%s1277_s28] sm:$0xff] %v704_v38  ;;  %v707_v43 = vadd.f32 %v685_v39, %v512_v36  ;;  %v677_v44 = vadd.f32 %v858_v25, %v676_v42  ;;  %v923_v45 = vpop.f32.mrf.mxu0 }
  0xfe   : > { %v515_v46 = vadd.f32 %v923_v45, %v845_v24  ;;  %v947_v47 = vpop.f32.mrf.mxu1 }
  0xff   : > { %715 = vst [vmem:[%s1277_s28 + $0x18] sm:$0xff] %v707_v43  ;;  %v705_v48 = vadd.f32 %v677_v44, %v510_v41  ;;  %v698_v49 = vadd.f32 %v947_v47, %v858_v25  ;;  %v494_v50 = vpop.f32.mrf.mxu0 }
 0x100   : > { %v513_v51 = vadd.f32 %v845_v24, %v494_v50  ;;  %v689_v52 = vpop.f32.mrf.mxu1 }
 0x101   : > { %713 = vst [vmem:[%s1277_s28 + $0x8] sm:$0xff] %v705_v48  ;;  %v710_v53 = vadd.f32 %v698_v49, %v515_v46  ;;  %v690_v54 = vadd.f32 %v858_v25, %v689_v52  ;;  %v924_v55 = vpop.f32.mrf.mxu0 }
 0x102   : > { %v516_v56 = vadd.f32 %v924_v55, %v845_v24  ;;  %v948_v57 = vpop.f32.mrf.mxu1 }
 0x103   : > { %718 = vst [vmem:[%s1277_s28 + $0x30] sm:$0xff] %v710_v53  ;;  %v708_v58 = vadd.f32 %v690_v54, %v513_v51  ;;  %v701_v59 = vadd.f32 %v948_v57, %v858_v25  ;;  %v497_v60 = vpop.f32.mrf.mxu0 }
 0x104   : > { %v514_v61 = vadd.f32 %v845_v24, %v497_v60  ;;  %v692_v62 = vpop.f32.mrf.mxu1 }
 0x105   : > { %716 = vst [vmem:[%s1277_s28 + $0x20] sm:$0xff] %v708_v58  ;;  %v711_v63 = vadd.f32 %v701_v59, %v516_v56  ;;  %v693_v0 = vadd.f32 %v858_v25, %v692_v62 }
 0x107   : > { %719 = vst [vmem:[%s1277_s28 + $0x38] sm:$0xff] %v711_v63  ;;  %v709_v1 = vadd.f32 %v693_v0, %v514_v61 }
 0x109   : > { %717 = vst [vmem:[%s1277_s28 + $0x28] sm:$0xff] %v709_v1 }
 0x10a   : > { %1043 = shalt.err (!%p1040_p5)
}
 0x10b   : > { %s1044_s13 = scalar_lea.hbm %s1290_s27, 1024  ;;  %s1048_s15 = scalar_lea.hbm %s1349_s6, 2048 }
 0x10c   : > { %p1045_p6 = scmp.ne.s32.totalorder %s1290_s27, %s1044_s13  ;;  %p1049_p10 = scmp.lt.s32.totalorder %s1290_s27, %s1349_s6 }
 0x10d   : > { %p1050_p11 = scmp.lt.s32.totalorder %s1048_s15, %s1044_s13 }
 0x10e   : > { %p1046_p7 = pnand %p1045_p6, %p1186_p4 }
 0x10f   : > { %p1051_p12 = por %p1050_p11, %p1049_p10 }
 0x110   : > { %p1047_p9 = pneg %p1046_p7 }
 0x112   : > { %p1052_p13 = pnand %p1051_p12, %p1047_p9 }
 0x114   : > { %1055 = shalt.err (!%p1052_p13)
}
 0x115   : > { %s1109_s19 = smov 128   ;;  %s1110_s20 = smov 8  }
 0x116   : > { %949 = dma.vmem_to_hbm [thread:$0]  (%p1186_p4), %s1292_s18, 1024, %s1290_s27, %s1298_s24, %s1109_s19, %s1109_s19, %s1110_s20  }
 0x117 PF: > { %p955_p0 = scmp.ge.s32.totalorder %s1106_s26, 2  ;;  %s749_s30 = sand.u32 1, %s1086_s21  }
 0x118   : > { %s750_s8 = scalar_lea.sflag [#allocation4], %s749_s30 }
 0x119   : > { %p952_p1 = pnand %p955_p0, %p1193_p8 }
 0x11b   : > { %p953_p2 = pneg %p952_p1 }
 0x11d   : > { %1081 = dma.done.wait (%p953_p2), %s750_s8, 1024  }
 0x11e   : > { %1083 = vsyncadd (%p953_p2), %s750_s8, 4294966272  ;;  %s19_s26 = sadd.s32 1, %s1106_s26   ;;  %s1352_s21 = smov %s1090_s22 }
 0x11f   : > { %p16_p3 = scmp.ge.s32.totalorder %s19_s26, 4   ;;  %s1353_s22 = smov %s1094_s23 }
 0x120   : > { %s1354_s23 = smov %s1199_s10  ;;  %s1355_s24 = smov %s1102_s25 }
 0x121   : > { %s1356_s25 = smov %s1358_s29  ;;  %18 = sbr.rel (!%p16_p3) target bundleno = 4 (0x4), region = 93 }
 0x126   :  { %755 = vsyncpa [#allocation4], 1 }
 0x127   :  { %757 = vsyncpa [#allocation4 + $0x1], 1 }

</bundles_post_ra>
